<compile_context>
chip_gen: v5e
topology: v5e:2x2
jax: 0.10.0
libtpu: 0.0.40
codegen_flags: <defaults>
</compile_context>

<pallas_src>
import functools

import jax
import jax.numpy as jnp
from jax.experimental import pallas as pl
from jax.experimental.pallas import tpu as pltpu


def _gc_kernel(x_ref, wk_ref, bk_ref, w1t_ref, b1_ref, g_ref, beta_ref,
               w2t_ref, b2_ref, o_ref, *, hw):
    x = x_ref[...]                                                   # (Bt, C, HWp)
    bt, c, hwp = x.shape

    # --- Conv_key (1x1 conv C -> 1): batched MXU matmul (1,C)@(C,HWp) -------
    # The tiny (Bt, 1, C) broadcast is what Mosaic's batched dot_general
    # needs; it is Bt*C elements and never the binder (HBM streaming of x is).
    wk = jnp.broadcast_to(wk_ref[...][None], (bt, 1, c))             # (Bt, 1, C)
    logits = jnp.einsum("buc,bcs->bus", wk, x,
                        preferred_element_type=jnp.float32)          # (Bt, 1, HWp)
    logits = logits + bk_ref[...]

    # --- softmax over the real HW spatial positions (norm deferred) ---------
    if hw != hwp:  # mask the lane-padding out of the softmax
        lane = jax.lax.broadcasted_iota(jnp.int32, (bt, 1, hwp), 2)
        logits = jnp.where(lane < hw, logits, -jnp.inf)
    m = jnp.max(logits, axis=-1, keepdims=True)                      # (Bt, 1, 1)
    e = jnp.exp(logits - m)                                          # (Bt, 1, HWp)
    l = jnp.sum(e, axis=-1, keepdims=True)                           # (Bt, 1, 1)

    # --- query @ key: global context pooling on the MXU ---------------------
    qk = jnp.einsum("bus,bcs->buc", e, x,
                    preferred_element_type=jnp.float32)              # (Bt, 1, C)
    qk = (qk / l)[:, 0, :]         # exact fold of the softmax denom -> (Bt, C)

    # --- Conv_value[0]: 1x1 conv C -> Cout as a (Bt,C)@(C,Cout) dot ----------
    v1 = jnp.dot(qk, w1t_ref[...],
                 preferred_element_type=jnp.float32) + b1_ref[...]   # (Bt, Cout)

    # --- LayerNorm over the Cout channels ------------------------------------
    mean = jnp.mean(v1, axis=-1, keepdims=True)
    var = jnp.mean((v1 - mean) ** 2, axis=-1, keepdims=True)
    ln = (v1 - mean) * jax.lax.rsqrt(var + 1e-5) * g_ref[...] + beta_ref[...]

    # --- ReLU + Conv_value[3]: 1x1 conv Cout -> C as (Bt,Cout)@(Cout,C) ------
    r = jnp.maximum(ln, 0.0)
    v2 = jnp.dot(r, w2t_ref[...],
                 preferred_element_type=jnp.float32) + b2_ref[...]   # (Bt, C)

    # --- residual add, context vector broadcast over all spatial positions ---
    o_ref[...] = (x.astype(jnp.float32) + v2[:, :, None]).astype(o_ref.dtype)


def _tpu_hw_info():
    """(vmem_capacity_bytes, tensorcores_per_chip) with safe fallbacks."""
    kind = ""
    try:
        kind = jax.devices()[0].device_kind.lower()
    except Exception:
        pass
    vmem = None
    try:
        info = pltpu.get_tpu_info()
        v = int(getattr(info, "vmem_capacity_bytes", 0))
        vmem = v if v > 0 else None
    except Exception:
        pass
    if vmem is None:
        vmem = (64 << 20) if "v7" in kind else (128 << 20)
    # v7x: 2 TensorCores/chip and 64 MiB VMEM per TC; v5e/v6e: 1 TC, 128 MiB.
    cores = 2 if ("v7" in kind or vmem <= (64 << 20)) else 1
    return vmem, cores


def _pick_batch_tile(B, C, HWp, target_tile_bytes, elem_bytes, num_cores):
    """Largest batch tile Bt such that (a) the (Bt, C, HWp) x tile stays near
    the byte target, (b) Bt divides B exactly, and (c) on 2-TensorCore chips
    (v7x) the grid length is a multiple of the core count so
    dimension_semantics=("parallel",) keeps both cores busy with no tail.
    Single-TC v5e/v6e simply take the largest divisor under the cap."""
    per_image = max(C * HWp * elem_bytes, 1)
    cap = max(1, min(B, target_tile_bytes // per_image))
    divisors = [d for d in range(1, B + 1) if B % d == 0 and d <= cap]
    if not divisors:
        divisors = [1]
    if num_cores > 1 and B >= num_cores:
        even = [d for d in divisors if (B // d) % num_cores == 0]
        if even:
            return max(even)
    return max(divisors)


def global_context_block(x, params, *, target_tile_bytes=None, alias_input=False):
    """x: (B, C, H, W). Returns (B, C, H, W) in x.dtype (pass bf16 to halve the
    HBM bytes; all contractions still accumulate in f32)."""
    B, C, H, W = x.shape
    HW = H * W
    HWp = ((HW + 127) // 128) * 128           # keep loads/stores lane-dense
    x_flat = x.reshape(B, C, HW)
    if HWp != HW:
        x_flat = jnp.pad(x_flat, ((0, 0), (0, 0), (0, HWp - HW)))

    vmem_cap, num_cores = _tpu_hw_info()
    if target_tile_bytes is None:
        # Size x tiles so 2 input + 2 output double-buffers plus ~8 MiB of
        # params/temporaries fit under the per-generation VMEM budget:
        # ~11 MiB tiles on v7x (64 MiB VMEM), ~25 MiB on v5e/v6e (128 MiB).
        target_tile_bytes = max(2 << 20, (int(vmem_cap * 0.85) - (8 << 20)) // 4)

    elem_bytes = jnp.dtype(x.dtype).itemsize
    bt = _pick_batch_tile(B, C, HWp, target_tile_bytes, elem_bytes, num_cores)
    grid = (B // bt,)

    tile_bytes = bt * C * HWp * elem_bytes
    # 2 in + 2 out x-tile buffers + params/temporaries headroom, floored at
    # 32 MiB and capped generation-aware (<=~54 MiB on v7x, ~108 MiB on v5e/v6e).
    vmem_limit = int(min(max(4 * tile_bytes + (8 << 20), 32 << 20),
                         int(vmem_cap * 0.85)))

    # TODO(synk): add spatial (online-softmax / two-pass) tiling for feature
    # maps where a single (C, HWp) image no longer double-buffers in VMEM;
    # this bites v7x (64 MiB VMEM) first, around C*HWp*4 > ~13 MiB.

    def full(p):
        return pl.BlockSpec(p.shape, lambda b: (0,) * p.ndim)

    extra = {}
    if alias_input:
        # Reuses the x buffer for the output.  Only a win when the caller
        # donates x; otherwise XLA inserts a defensive copy of the operand.
        extra["input_output_aliases"] = {0: 0}

    out = pl.pallas_call(
        functools.partial(_gc_kernel, hw=HW),
        out_shape=jax.ShapeDtypeStruct((B, C, HWp), x.dtype),
        grid=grid,
        in_specs=[
            pl.BlockSpec((bt, C, HWp), lambda b: (b, 0, 0)),  # x tile
            full(params["wk"]),     # key conv weight   (1, C)
            full(params["bk"]),     # key conv bias     (1, 1)
            full(params["w1t"]),    # value conv1 w^T   (C, Cout)
            full(params["b1"]),     # value conv1 bias  (1, Cout)
            full(params["gamma"]),  # layernorm gamma   (1, Cout)
            full(params["beta"]),   # layernorm beta    (1, Cout)
            full(params["w2t"]),    # value conv2 w^T   (Cout, C)
            full(params["b2"]),     # value conv2 bias  (1, C)
        ],
        out_specs=pl.BlockSpec((bt, C, HWp), lambda b: (b, 0, 0)),
        compiler_params=pltpu.CompilerParams(
            dimension_semantics=("parallel",),
            vmem_limit_bytes=vmem_limit,
        ),
        **extra,
    )(x_flat, params["wk"], params["bk"], params["w1t"], params["b1"],
      params["gamma"], params["beta"], params["w2t"], params["b2"])

    if HWp != HW:
        out = out[:, :, :HW]
    return out.reshape(B, C, H, W)


def reference(x, params):
    """Pure-JAX reference replicating the PyTorch forward."""
    B, C, H, W = x.shape
    xf = x.reshape(B, C, H * W).astype(jnp.float32)
    logits = jnp.einsum("c,bcs->bs", params["wk"][0], xf) + params["bk"][0, 0]
    key = jax.nn.softmax(logits, axis=-1)
    qk = jnp.einsum("bcs,bs->bc", xf, key)
    v1 = qk @ params["w1t"] + params["b1"][0]
    mean = v1.mean(-1, keepdims=True)
    var = ((v1 - mean) ** 2).mean(-1, keepdims=True)
    ln = (v1 - mean) / jnp.sqrt(var + 1e-5) * params["gamma"][0] + params["beta"][0]
    r = jnp.maximum(ln, 0.0)
    v2 = r @ params["w2t"] + params["b2"][0]
    return (xf + v2[:, :, None]).reshape(B, C, H, W).astype(x.dtype)


def make_params(key, C, Cout):
    ks = jax.random.split(key, 8)
    return {
        # Conv_key: Conv2d(C, 1, 1) -> weight as a (1, C) row, bias (1, 1)
        "wk": 0.1 * jax.random.normal(ks[0], (1, C), jnp.float32),
        "bk": 0.1 * jax.random.normal(ks[1], (1, 1), jnp.float32),
        # Conv_value[0]: Conv2d(C, Cout, 1) -> weight stored transposed (C, Cout)
        "w1t": 0.1 * jax.random.normal(ks[2], (C, Cout), jnp.float32),
        "b1": 0.1 * jax.random.normal(ks[3], (1, Cout), jnp.float32),
        # LayerNorm([Cout, 1, 1])
        "gamma": 1.0 + 0.1 * jax.random.normal(ks[4], (1, Cout), jnp.float32),
        "beta": 0.1 * jax.random.normal(ks[5], (1, Cout), jnp.float32),
        # Conv_value[3]: Conv2d(Cout, C, 1) -> weight stored transposed (Cout, C)
        "w2t": 0.1 * jax.random.normal(ks[6], (Cout, C), jnp.float32),
        "b2": 0.1 * jax.random.normal(ks[7], (1, C), jnp.float32),
    }


if __name__ == "__main__":
    B, C, H, W = 2, 32, 16, 16          # in_channels=32, scale=16 -> out_channels=2
    Cout = C // 16

    root = jax.random.PRNGKey(0)
    kx, kp = jax.random.split(root)
    x = jax.random.normal(kx, (B, C, H, W), jnp.float32)
    params = make_params(kp, C, Cout)

    out = global_context_block(x, params)
    out = jax.block_until_ready(out)

    ref = reference(x, params)
    assert out.shape == (B, C, H, W)
    # exact softmax-denominator divide now; remaining delta is default MXU
    # f32 matmul precision vs the XLA reference path
    assert jnp.allclose(out, ref, atol=2e-3, rtol=2e-3), "mismatch vs reference"

    print("KERNEL_OK")
</pallas_src>

<mosaic_0001>
module attributes {stable_mosaic.version = 11 : i64} {
  func.func @_gc_kernel(%arg0: i32, %arg1: memref<2x32x256xf32, #tpu.memory_space<vmem>>, %arg2: memref<1x32xf32, #tpu.memory_space<vmem>>, %arg3: memref<1x1xf32, #tpu.memory_space<vmem>>, %arg4: memref<32x2xf32, #tpu.memory_space<vmem>>, %arg5: memref<1x2xf32, #tpu.memory_space<vmem>>, %arg6: memref<1x2xf32, #tpu.memory_space<vmem>>, %arg7: memref<1x2xf32, #tpu.memory_space<vmem>>, %arg8: memref<2x32xf32, #tpu.memory_space<vmem>>, %arg9: memref<1x32xf32, #tpu.memory_space<vmem>>, %arg10: memref<2x32x256xf32, #tpu.memory_space<vmem>>) attributes {dimension_semantics = [#tpu.dimension_semantics<parallel>], iteration_bounds = array<i64: 1>, scalar_prefetch = 0 : i64, scratch_operands = 0 : i64, tpu.core_type = #tpu.core_type<tc>, window_params = [{transform_indices = @transform_0, window_bounds = array<i64: 2, 32, 256>}, {pipeline_mode = #tpu.pipeline_mode<synchronous>, transform_indices = @transform_1, window_bounds = array<i64: 1, 32>}, {pipeline_mode = #tpu.pipeline_mode<synchronous>, transform_indices = @transform_2, window_bounds = array<i64: 1, 1>}, {pipeline_mode = #tpu.pipeline_mode<synchronous>, transform_indices = @transform_3, window_bounds = array<i64: 32, 2>}, {pipeline_mode = #tpu.pipeline_mode<synchronous>, transform_indices = @transform_4, window_bounds = array<i64: 1, 2>}, {pipeline_mode = #tpu.pipeline_mode<synchronous>, transform_indices = @transform_5, window_bounds = array<i64: 1, 2>}, {pipeline_mode = #tpu.pipeline_mode<synchronous>, transform_indices = @transform_6, window_bounds = array<i64: 1, 2>}, {pipeline_mode = #tpu.pipeline_mode<synchronous>, transform_indices = @transform_7, window_bounds = array<i64: 2, 32>}, {pipeline_mode = #tpu.pipeline_mode<synchronous>, transform_indices = @transform_8, window_bounds = array<i64: 1, 32>}, {transform_indices = @transform_9, window_bounds = array<i64: 2, 32, 256>}]} {
    %c0 = arith.constant 0 : index
    %c0_0 = arith.constant 0 : index
    %c0_1 = arith.constant 0 : index
    %0 = vector.load %arg1[%c0, %c0_0, %c0_1] : memref<2x32x256xf32, #tpu.memory_space<vmem>>, vector<2x32x256xf32>
    %c0_2 = arith.constant 0 : index
    %c0_3 = arith.constant 0 : index
    %1 = vector.load %arg2[%c0_2, %c0_3] : memref<1x32xf32, #tpu.memory_space<vmem>>, vector<1x32xf32>
    %2 = vector.shape_cast %1 : vector<1x32xf32> to vector<1x1x32xf32>
    %3 = vector.shape_cast %2 : vector<1x1x32xf32> to vector<1x1x32xf32>
    %4 = vector.broadcast %3 : vector<1x1x32xf32> to vector<2x1x32xf32>
    "tpu.trace_start"() <{level = 10 : i32, message = "buc,bcs->bus"}> : () -> ()
    %cst = arith.constant dense<0.000000e+00> : vector<2x1x256xf32>
    %5 = tpu.matmul %4, %0, %cst {dimension_numbers = #tpu.dot_dimension_numbers<[2], [1], [1], [2], [0, 0, 0, 1, 1, 2], [0], [0]>} : vector<2x1x32xf32>, vector<2x32x256xf32>, vector<2x1x256xf32> -> vector<2x1x256xf32>
    "tpu.trace_stop"() : () -> ()
    %c0_4 = arith.constant 0 : index
    %c0_5 = arith.constant 0 : index
    %6 = vector.load %arg3[%c0_4, %c0_5] : memref<1x1xf32, #tpu.memory_space<vmem>>, vector<1x1xf32>
    %7 = vector.shape_cast %6 : vector<1x1xf32> to vector<1x1x1xf32>
    %8 = vector.broadcast %7 : vector<1x1x1xf32> to vector<2x1x256xf32>
    %9 = arith.addf %5, %8 : vector<2x1x256xf32>
    %cst_6 = arith.constant dense<0xFF800000> : vector<2x1xf32>
    %10 = vector.multi_reduction <maximumf>, %9, %cst_6 [2] : vector<2x1x256xf32> to vector<2x1xf32>
    %11 = vector.shape_cast %10 : vector<2x1xf32> to vector<2x1x1xf32>
    %12 = vector.broadcast %11 : vector<2x1x1xf32> to vector<2x1x256xf32>
    %13 = arith.subf %9, %12 : vector<2x1x256xf32>
    %14 = math.exp %13 : vector<2x1x256xf32>
    %cst_7 = arith.constant dense<0.000000e+00> : vector<2x1xf32>
    %15 = vector.multi_reduction <add>, %14, %cst_7 [2] : vector<2x1x256xf32> to vector<2x1xf32>
    %16 = vector.shape_cast %15 : vector<2x1xf32> to vector<2x1x1xf32>
    "tpu.trace_start"() <{level = 10 : i32, message = "bus,bcs->buc"}> : () -> ()
    %cst_8 = arith.constant dense<0.000000e+00> : vector<2x1x32xf32>
    %17 = tpu.matmul %14, %0, %cst_8 {dimension_numbers = #tpu.dot_dimension_numbers<[2], [2], [1], [1], [0, 0, 0, 1, 1, 1], [0], [0]>} : vector<2x1x256xf32>, vector<2x32x256xf32>, vector<2x1x32xf32> -> vector<2x1x32xf32>
    "tpu.trace_stop"() : () -> ()
    %18 = vector.broadcast %16 : vector<2x1x1xf32> to vector<2x1x32xf32>
    %19 = arith.divf %17, %18 : vector<2x1x32xf32>
    %20 = vector.shape_cast %19 : vector<2x1x32xf32> to vector<2x32xf32>
    %c0_9 = arith.constant 0 : index
    %c0_10 = arith.constant 0 : index
    %21 = vector.load %arg4[%c0_9, %c0_10] : memref<32x2xf32, #tpu.memory_space<vmem>>, vector<32x2xf32>
    %cst_11 = arith.constant dense<0.000000e+00> : vector<2x2xf32>
    %22 = tpu.matmul %20, %21, %cst_11 {dimension_numbers = #tpu.dot_dimension_numbers<[1], [0], [0], [1], [0, 0, 1, 1], [], []>} : vector<2x32xf32>, vector<32x2xf32>, vector<2x2xf32> -> vector<2x2xf32>
    %c0_12 = arith.constant 0 : index
    %c0_13 = arith.constant 0 : index
    %23 = vector.load %arg5[%c0_12, %c0_13] : memref<1x2xf32, #tpu.memory_space<vmem>>, vector<1x2xf32>
    %24 = vector.broadcast %23 : vector<1x2xf32> to vector<2x2xf32>
    %25 = arith.addf %22, %24 : vector<2x2xf32>
    %cst_14 = arith.constant dense<0.000000e+00> : vector<2xf32>
    %26 = vector.multi_reduction <add>, %25, %cst_14 [1] : vector<2x2xf32> to vector<2xf32>
    %27 = vector.shape_cast %26 : vector<2xf32> to vector<2x1xf32>
    %cst_15 = arith.constant 2.000000e+00 : f32
    %28 = vector.broadcast %cst_15 : f32 to vector<2x1xf32>
    %29 = arith.divf %27, %28 : vector<2x1xf32>
    %30 = vector.broadcast %29 : vector<2x1xf32> to vector<2x2xf32>
    %31 = arith.subf %25, %30 : vector<2x2xf32>
    %32 = arith.mulf %31, %31 : vector<2x2xf32>
    %cst_16 = arith.constant dense<0.000000e+00> : vector<2xf32>
    %33 = vector.multi_reduction <add>, %32, %cst_16 [1] : vector<2x2xf32> to vector<2xf32>
    %34 = vector.shape_cast %33 : vector<2xf32> to vector<2x1xf32>
    %cst_17 = arith.constant 2.000000e+00 : f32
    %35 = vector.broadcast %cst_17 : f32 to vector<2x1xf32>
    %36 = arith.divf %34, %35 : vector<2x1xf32>
    %37 = vector.broadcast %29 : vector<2x1xf32> to vector<2x2xf32>
    %38 = arith.subf %25, %37 : vector<2x2xf32>
    %cst_18 = arith.constant 9.99999974E-6 : f32
    %39 = vector.broadcast %cst_18 : f32 to vector<2x1xf32>
    %40 = arith.addf %36, %39 : vector<2x1xf32>
    %41 = math.rsqrt %40 : vector<2x1xf32>
    %42 = vector.broadcast %41 : vector<2x1xf32> to vector<2x2xf32>
    %43 = arith.mulf %38, %42 : vector<2x2xf32>
    %c0_19 = arith.constant 0 : index
    %c0_20 = arith.constant 0 : index
    %44 = vector.load %arg6[%c0_19, %c0_20] : memref<1x2xf32, #tpu.memory_space<vmem>>, vector<1x2xf32>
    %45 = vector.broadcast %44 : vector<1x2xf32> to vector<2x2xf32>
    %46 = arith.mulf %43, %45 : vector<2x2xf32>
    %c0_21 = arith.constant 0 : index
    %c0_22 = arith.constant 0 : index
    %47 = vector.load %arg7[%c0_21, %c0_22] : memref<1x2xf32, #tpu.memory_space<vmem>>, vector<1x2xf32>
    %48 = vector.broadcast %47 : vector<1x2xf32> to vector<2x2xf32>
    %49 = arith.addf %46, %48 : vector<2x2xf32>
    %cst_23 = arith.constant 0.000000e+00 : f32
    %50 = vector.broadcast %cst_23 : f32 to vector<2x2xf32>
    %51 = arith.maximumf %49, %50 : vector<2x2xf32>
    %c0_24 = arith.constant 0 : index
    %c0_25 = arith.constant 0 : index
    %52 = vector.load %arg8[%c0_24, %c0_25] : memref<2x32xf32, #tpu.memory_space<vmem>>, vector<2x32xf32>
    %cst_26 = arith.constant dense<0.000000e+00> : vector<2x32xf32>
    %53 = tpu.matmul %51, %52, %cst_26 {dimension_numbers = #tpu.dot_dimension_numbers<[1], [0], [0], [1], [0, 0, 1, 1], [], []>} : vector<2x2xf32>, vector<2x32xf32>, vector<2x32xf32> -> vector<2x32xf32>
    %c0_27 = arith.constant 0 : index
    %c0_28 = arith.constant 0 : index
    %54 = vector.load %arg9[%c0_27, %c0_28] : memref<1x32xf32, #tpu.memory_space<vmem>>, vector<1x32xf32>
    %55 = vector.broadcast %54 : vector<1x32xf32> to vector<2x32xf32>
    %56 = arith.addf %53, %55 : vector<2x32xf32>
    %57 = vector.shape_cast %56 : vector<2x32xf32> to vector<2x32x1xf32>
    %58 = vector.broadcast %57 : vector<2x32x1xf32> to vector<2x32x256xf32>
    %59 = arith.addf %0, %58 : vector<2x32x256xf32>
    %c0_29 = arith.constant 0 : index
    %c0_30 = arith.constant 0 : index
    %c0_31 = arith.constant 0 : index
    %60 = vector.load %arg10[%c0_29, %c0_30, %c0_31] : memref<2x32x256xf32, #tpu.memory_space<vmem>>, vector<2x32x256xf32>
    tpu.vector_store %arg10[%c0_29, %c0_30, %c0_31], %59 {strides = array<i32>} : memref<2x32x256xf32, #tpu.memory_space<vmem>>, vector<2x32x256xf32>,
    return
  }
  func.func @transform_0(%arg0: i32) -> (i32, i32, i32) {
    %c0_i32 = arith.constant 0 : i32
    %c0_i32_0 = arith.constant 0 : i32
    %c0_i32_1 = arith.constant 0 : i32
    return %arg0, %c0_i32, %c0_i32_0 : i32, i32, i32
  }
  func.func @transform_1(%arg0: i32) -> (i32, i32) {
    %c0_i32 = arith.constant 0 : i32
    %c0_i32_0 = arith.constant 0 : i32
    %c0_i32_1 = arith.constant 0 : i32
    return %c0_i32, %c0_i32_0 : i32, i32
  }
  func.func @transform_2(%arg0: i32) -> (i32, i32) {
    %c0_i32 = arith.constant 0 : i32
    %c0_i32_0 = arith.constant 0 : i32
    %c0_i32_1 = arith.constant 0 : i32
    return %c0_i32, %c0_i32_0 : i32, i32
  }
  func.func @transform_3(%arg0: i32) -> (i32, i32) {
    %c0_i32 = arith.constant 0 : i32
    %c0_i32_0 = arith.constant 0 : i32
    %c0_i32_1 = arith.constant 0 : i32
    return %c0_i32, %c0_i32_0 : i32, i32
  }
  func.func @transform_4(%arg0: i32) -> (i32, i32) {
    %c0_i32 = arith.constant 0 : i32
    %c0_i32_0 = arith.constant 0 : i32
    %c0_i32_1 = arith.constant 0 : i32
    return %c0_i32, %c0_i32_0 : i32, i32
  }
  func.func @transform_5(%arg0: i32) -> (i32, i32) {
    %c0_i32 = arith.constant 0 : i32
    %c0_i32_0 = arith.constant 0 : i32
    %c0_i32_1 = arith.constant 0 : i32
    return %c0_i32, %c0_i32_0 : i32, i32
  }
  func.func @transform_6(%arg0: i32) -> (i32, i32) {
    %c0_i32 = arith.constant 0 : i32
    %c0_i32_0 = arith.constant 0 : i32
    %c0_i32_1 = arith.constant 0 : i32
    return %c0_i32, %c0_i32_0 : i32, i32
  }
  func.func @transform_7(%arg0: i32) -> (i32, i32) {
    %c0_i32 = arith.constant 0 : i32
    %c0_i32_0 = arith.constant 0 : i32
    %c0_i32_1 = arith.constant 0 : i32
    return %c0_i32, %c0_i32_0 : i32, i32
  }
  func.func @transform_8(%arg0: i32) -> (i32, i32) {
    %c0_i32 = arith.constant 0 : i32
    %c0_i32_0 = arith.constant 0 : i32
    %c0_i32_1 = arith.constant 0 : i32
    return %c0_i32, %c0_i32_0 : i32, i32
  }
  func.func @transform_9(%arg0: i32) -> (i32, i32, i32) {
    %c0_i32 = arith.constant 0 : i32
    %c0_i32_0 = arith.constant 0 : i32
    %c0_i32_1 = arith.constant 0 : i32
    return %arg0, %c0_i32, %c0_i32_0 : i32, i32, i32
  }
}

</mosaic_0001>

<bundles_post_ra>
// kernel: tpu_custom_call.1
= control target key start
LH: loop header
LB: loop body
LE: loop exit
PB: predicated region body
PF: predicated region fallthrough
CT: control target
= control target key end

     0   :  { %s809_s0 = inlined_call_operand.hbm [shape: f32[2,32,256], index: 0, kind: input, shape index: {}]   ;;  %s810_s1 = inlined_call_operand.vmem [shape: f32[1,32], index: 1, kind: input, shape index: {}]   ;;  %s811_s2 = inlined_call_operand.<no memory space> [shape: f32[1,1], index: 2, kind: input, shape index: {}]   ;;  %s812_s3 = inlined_call_operand.vmem [shape: f32[32,2], index: 3, kind: input, shape index: {}]   ;;  %s813_s4 = inlined_call_operand.vmem [shape: f32[1,2], index: 4, kind: input, shape index: {}]   ;;  %s814_s5 = inlined_call_operand.vmem [shape: f32[1,2], index: 5, kind: input, shape index: {}]   ;;  %s815_s6 = inlined_call_operand.vmem [shape: f32[1,2], index: 6, kind: input, shape index: {}]   ;;  %s816_s7 = inlined_call_operand.vmem [shape: f32[2,32], index: 7, kind: input, shape index: {}]   ;;  %s817_s8 = inlined_call_operand.vmem [shape: f32[1,32], index: 8, kind: input, shape index: {}]   ;;  %s818_s9 = inlined_call_operand.hbm [shape: f32[2,32,256], index: 9, kind: output, shape index: {}]  }
   0x1   :  { %v14_v0 = vstv %s811_s2 }
   0x2   :  { %15 = vst [vmem:[#allocation2] sm:$0x1] %v14_v0 }
   0x3   :  { %16 = vsyncpa [#allocation4], 0 }
   0x4   :  { %17 = vsyncpa [#allocation5], 0  ;;  %s22_s13 = sshll.u32 %s809_s0, 4  ;;  %s607_s14 = smov [#allocation3]   ;;  %s23_s13 = int_to_ptr.hbm [resolvable:$true] %s22_s13 }
   0x5   :  { %s24_s15 = sshll.u32 %s607_s14, 4  ;;  %s608_s16 = smov 256   ;;  %s25_s15 = int_to_ptr.vmem [resolvable:$true] %s24_s15 }
   0x6   :  { %s609_s17 = smov 16  }
   0x7   :  { %30 = dma.hbm_to_vmem [thread:$0]  %s23_s13, 2048, %s25_s15, [#allocation4], %s608_s16, %s608_s16, %s609_s17  }
   0x8   :  { %603 = dma.done.wait [#allocation4], 2048  }
   0x9   :  { %604 = vsyncadd [#allocation4], 4294965248  ;;  %v610_v1 = vmov 0   ;;  %v672_v2 = vld [vmem:[#allocation3 + $0x30] sm:$0xff]  ;;  %v674_v3 = vld [vmem:[#allocation3 + $0x38] sm:$0xff]  ;;  %vm75_vm0 = vcmask 261120  }
   0xa   :  { %525 = vset.pattern.permute.xlu0 %v610_v1  ;;  %v676_v4 = vld [vmem:[#allocation3 + $0x70] sm:$0xff]  ;;  %91 = vmatpush.msra.mxu0 %v672_v2  ;;  %v680_v5 = vld [vmem:[#allocation3 + $0x78] sm:$0xff]  ;;  %v682_v6 = vld [vmem:[#allocation3 + $0x20] sm:$0xff]  ;;  %vm159_vm1 = vcmask 1040384   ;;  %vm313_vm10 = vcmask 1041409   ;;  %vm337_vm11 = vcmask 9216  }
   0xb   :  { %111 = vmatpush.msra.mxu1 %v674_v3  ;;  %v684_v7 = vld [vmem:[#allocation3 + $0x28] sm:$0xff]  ;;  %131 = vmatpush.msra.mxu2 %v676_v4  ;;  %v688_v8 = vld [vmem:[#allocation3 + $0x60] sm:$0xff]  ;;  %v692_v10 = vld [vmem:[#allocation3 + $0x10] sm:$0xff]  ;;  %vm387_vm13 = vcmask 1041408   ;;  %s499_s12 = sshll.u32 %s818_s9, 4  ;;  %s500_s12 = int_to_ptr.hbm [resolvable:$true] %s499_s12 }
   0xc   :  { %151 = vmatpush.msra.mxu3 %v680_v5  ;;  %v690_v9 = vld [vmem:[#allocation3 + $0x68] sm:$0xff]  ;;  %92 = vmatpush.msra.mxu0 %v682_v6  ;;  %v696_v11 = vld [vmem:[#allocation3 + $0x18] sm:$0xff]  ;;  %v698_v12 = vld [vmem:[#allocation3 + $0x50] sm:$0xff] }
   0xd   :  { %112 = vmatpush.msra.mxu1 %v684_v7  ;;  %v700_v13 = vld [vmem:[#allocation3 + $0x58] sm:$0xff]  ;;  %132 = vmatpush.msra.mxu2 %v688_v8  ;;  %v704_v14 = vld [vmem:[#allocation3] sm:$0xff]  ;;  %v706_v15 = vld [vmem:[#allocation3 + $0x8] sm:$0xff] }
   0xe   :  { %152 = vmatpush.msra.mxu3 %v690_v9  ;;  %93 = vmatpush.msra.mxu0 %v692_v10  ;;  %v710_v16 = vld [vmem:[#allocation3 + $0x40] sm:$0xff]  ;;  %v712_v17 = vld [vmem:[#allocation3 + $0x48] sm:$0xff]  ;;  %v67_v18 = vld [vmem:[%s810_s1] sm:$0x1] }
   0xf   :  { %113 = vmatpush.msra.mxu1 %v696_v11  ;;  %133 = vmatpush.msra.mxu2 %v698_v12  ;;  %v68_v19 = vld [vmem:[#allocation2] sm:$0x1]  ;;  %v305_v56 = vld [vmem:[%s812_s3 + $0x18] sm:$0xff]  ;;  %v304_v57 = vld [vmem:[%s812_s3 + $0x10] sm:$0xff] }
  0x10   :  { %153 = vmatpush.msra.mxu3 %v700_v13  ;;  %94 = vmatpush.msra.mxu0 %v704_v14  ;;  %v303_v58 = vld [vmem:[%s812_s3 + $0x8] sm:$0xff]  ;;  %v302_v59 = vld [vmem:[%s812_s3] sm:$0xff] }
  0x11   :  { %114 = vmatpush.msra.mxu1 %v706_v15  ;;  %134 = vmatpush.msra.mxu2 %v710_v16 }
  0x12   :  { %154 = vmatpush.msra.mxu3 %v712_v17  ;;  %512 = vmatmul.msk.f32.vlgmr.msra.gmra.mxu0 %vm75_vm0, %v67_v18 }
  0x13   :  { %513 = vmatmul.msk.f32.vlgmr.msra.gmra.mxu1 %vm75_vm0, %v67_v18  ;;  %514 = vmatmul.msk.f32.vlgmr.msra.gmra.mxu2 %vm75_vm0, %v67_v18 }
  0x14   :  { %515 = vmatmul.msk.f32.vlgmr.msra.gmra.mxu3 %vm75_vm0, %v67_v18  ;;  %71 = vperm.xlu0 %525, %v68_v19  }
  0x15   :  { %204 = vmatpush.xpose.msrb.mxu0 %v672_v2  ;;  %224 = vmatpush.xpose.msrb.mxu1 %v674_v3 }
  0x16   :  { %244 = vmatpush.xpose.msrb.mxu2 %v676_v4  ;;  %264 = vmatpush.xpose.msrb.mxu3 %v680_v5 }
  0x19   :  { %205 = vmatpush.xpose.msrb.mxu0 %v682_v6  ;;  %225 = vmatpush.xpose.msrb.mxu1 %v684_v7 }
  0x1a   :  { %245 = vmatpush.xpose.msrb.mxu2 %v688_v8  ;;  %265 = vmatpush.xpose.msrb.mxu3 %v690_v9 }
  0x1d   :  { %206 = vmatpush.xpose.msrb.mxu0 %v692_v10  ;;  %226 = vmatpush.xpose.msrb.mxu1 %v696_v11 }
  0x1e   :  { %246 = vmatpush.xpose.msrb.mxu2 %v698_v12  ;;  %266 = vmatpush.xpose.msrb.mxu3 %v700_v13 }
  0x21   :  { %207 = vmatpush.xpose.msrb.mxu0 %v704_v14  ;;  %227 = vmatpush.xpose.msrb.mxu1 %v706_v15 }
  0x22   :  { %247 = vmatpush.xpose.msrb.mxu2 %v710_v16  ;;  %267 = vmatpush.xpose.msrb.mxu3 %v712_v17 }
  0x25   :  { %329 = vmatpush.msra.mxu0 %v305_v56 }
  0x27   :  { %330 = vmatpush.msra.mxu0 %v304_v57 }
  0x29   :  { %331 = vmatpush.msra.mxu0 %v303_v58 }
  0x2b   :  { %332 = vmatpush.msra.mxu0 %v302_v59 }
  0x86   :  { %v72_v20 = vpop.permute.xlu0 %71 }
  0x87   :  { %v74_v21 = vperm.slane %v72_v20, 0 }
  0x8f   :  { %v96_v22 = vpop.f32.mrf.mxu0 }
  0x90   :  { %v116_v23 = vpop.f32.mrf.mxu1  ;;  %v97_v24 = vadd.f32 %v96_v22, %v74_v21 }
  0x91   :  { %v117_v25 = vadd.f32 %v116_v23, %v74_v21 }
  0x92   :  { %v160_v26 = vsel %vm159_vm1, %v97_v24, -inf }
  0x93   :  { %v161_v27 = vsel %vm159_vm1, %v117_v25, -inf }
  0x94   :  { %v162_v28 = vmax.f32 %v160_v26, %v161_v27 }
  0x96   :  { %163 = vmax.xlane.f32.xlu1 %v162_v28  ;;  %v136_v29 = vpop.f32.mrf.mxu2 }
  0x97   :  { %v156_v30 = vpop.f32.mrf.mxu3  ;;  %v137_v31 = vadd.f32 %v136_v29, %v74_v21 }
  0x98   :  { %v157_v32 = vadd.f32 %v156_v30, %v74_v21 }
  0x99   :  { %v165_v33 = vsel %vm159_vm1, %v137_v31, -inf }
  0x9a   :  { %v166_v34 = vsel %vm159_vm1, %v157_v32, -inf }
  0x9b   :  { %v167_v35 = vmax.f32 %v165_v33, %v166_v34 }
  0x9d   :  { %168 = vmax.xlane.f32.xlu0 %v167_v35 }
 0x109   :  { %v164_v36 = vpop.xlane.xlu1 %163 }
 0x10a   :  { %v170_v37 = vsub.f32 %v97_v24, %v164_v36  ;;  %v171_v38 = vsub.f32 %v117_v25, %v164_v36 }
 0x10c   :  { %v174_v39 = vmul.f32 1.442695, %v170_v37  ;;  %v176_v40 = vmul.f32 1.442695, %v171_v38 }
 0x10e   :  { %539 = vpow2.f32 %v174_v39 }
 0x10f   :  { %541 = vpow2.f32 %v176_v40 }
 0x110   :  { %v169_v41 = vpop.xlane.xlu0 %168 }
 0x111   :  { %v172_v42 = vsub.f32 %v137_v31, %v169_v41  ;;  %v173_v43 = vsub.f32 %v157_v32, %v169_v41 }
 0x113   :  { %v178_v44 = vmul.f32 1.442695, %v172_v42  ;;  %v180_v45 = vmul.f32 1.442695, %v173_v43 }
 0x114   :  { %v540_v46 = vpop.eup %539 }
 0x115   :  { %v542_v47 = vpop.eup %541  ;;  %543 = vpow2.f32 %v178_v44  ;;  %208 = vmatmul.f32.vlgmr.msrb.gmra.mxu0 %v540_v46  ;;  %v182_v48 = vsel %vm159_vm1, %v540_v46, 0.0 }
 0x116   :  { %545 = vpow2.f32 %v180_v45  ;;  %228 = vmatmul.f32.vlgmr.msrb.gmra.mxu1 %v542_v47  ;;  %v183_v49 = vsel %vm159_vm1, %v542_v47, 0.0  ;;  %v535_v45 = vld [vmem:[%s813_s4] ss:$0 sm:$0xff] }
 0x117   :  { %v184_v50 = vadd.f32 %v183_v49, %v182_v48  ;;  %v611_v49 = vmov 2.0  }
 0x119   :  { %185 = vadd.xlane.f32.xlu2 %v184_v50 }
 0x11b   :  { %v544_v51 = vpop.eup %543 }
 0x11c   :  { %v546_v52 = vpop.eup %545  ;;  %248 = vmatmul.f32.vlgmr.msrb.gmra.mxu2 %v544_v51  ;;  %v187_v53 = vsel %vm159_vm1, %v544_v51, 0.0 }
 0x11d   :  { %268 = vmatmul.f32.vlgmr.msrb.gmra.mxu3 %v546_v52  ;;  %v188_v54 = vsel %vm159_vm1, %v546_v52, 0.0  ;;  %vm383_vm1 = vcmask 15360  }
 0x11e   :  { %v189_v55 = vadd.f32 %v188_v54, %v187_v53 }
 0x120   :  { %190 = vadd.xlane.f32.xlu1 %v189_v55 }
 0x18c   :  { %v186_v60 = vpop.xlane.xlu2 %185 }
 0x18d   :  { %547 = vrcp.f32 %v186_v60  ;;  %vm277_vm3 = vweird.f32 %v186_v60  ;;  %v283_v22 = vand.u32 2147483648, %v186_v60  ;;  %v281_v25 = vand.u32 2147483647, %v186_v60 }
 0x18f   :  { %v284_v34 = vor.u32 1.1754944e-38, %v283_v22  ;;  %vm282_vm8 = vcmp.eq.f32.partialorder %v281_v25, 8.507059e+37 }
 0x192   :  { %v209_v32 = vpop.f32.mrf.mxu0 }
 0x193   :  { %v548_v61 = vpop.eup %547  ;;  %v191_v62 = vpop.xlane.xlu1 %190 }
 0x194   :  { %v273_v63 = vmul.f32 %v548_v61, %v186_v60  ;;  %549 = vrcp.f32 %v191_v62  ;;  %vm278_vm2 = vweird.f32 %v548_v61  ;;  %v298_v23 = vand.u32 2147483648, %v191_v62  ;;  %v229_v33 = vpop.f32.mrf.mxu1 }
 0x195   :  { %v296_v26 = vand.u32 2147483647, %v191_v62  ;;  %vm763_vm5 = vmor %vm277_vm3, %vm278_vm2  ;;  %vm292_vm6 = vweird.f32 %v191_v62  ;;  %v230_v40 = vadd.f32 %v229_v33, %v209_v32  ;;  %551 = vrcp.f32 %v611_v49  ;;  %v538_v33 = vld [vmem:[%s817_s8] ss:$0 sm:$0xff] }
 0x196   :  { %v274_v0 = vsub.f32 1.0, %v273_v63  ;;  %v299_v35 = vor.u32 1.1754944e-38, %v298_v23 }
 0x197   :  { %vm297_vm9 = vcmp.eq.f32.partialorder %v296_v26, 8.507059e+37  ;;  %v536_v26 = vld [vmem:[%s814_s5] ss:$0 sm:$0xff]  ;;  %s612_s5 = smov [#allocation6]  }
 0x198   :  { %v275_v1 = vmul.f32 %v548_v61, %v274_v0 }
 0x19a   :  { %v550_v18 = vpop.eup %549  ;;  %v276_v21 = vadd.f32 %v548_v61, %v275_v1 }
 0x19b   :  { %v288_v19 = vmul.f32 %v550_v18, %v191_v62  ;;  %vm293_vm4 = vweird.f32 %v550_v18  ;;  %v552_v50 = vpop.eup %551  ;;  %v412_v62 = vlaneseq }
 0x19c   :  { %v280_v30 = vsel %vm763_vm5, %v548_v61, %v276_v21  ;;  %vm294_vm7 = vmor %vm292_vm6, %vm293_vm4  ;;  %v342_v51 = vmul.f32 2.0, %v552_v50  ;;  %vm346_vm12 = vweird.f32 %v552_v50  ;;  %v378_v61 = vld [vmem:[%s816_s7] sm:$0x3] }
 0x19d   :  { %v289_v20 = vsub.f32 1.0, %v288_v19  ;;  %v285_v38 = vsel %vm282_vm8, %v284_v34, %v280_v30  ;;  %517 = vmatpush.msk.msra.mxu1 %vm387_vm13, %v378_v61  ;;  %v413_v1 = vshrl.u32 %v412_v62, 7 }
 0x19e   :  { %v286_v42 = vmul.f32 %v285_v38, %v230_v40  ;;  %v343_v52 = vsub.f32 1.0, %v342_v51 }
 0x19f   :  { %v290_v24 = vmul.f32 %v550_v18, %v289_v20  ;;  %v249_v28 = vpop.f32.mrf.mxu2  ;;  %526 = vset.pattern.permute.xlu2 %v413_v1  ;;  %v420_v19 = vadd.s32 8, %v413_v1  ;;  %v426_v38 = vadd.s32 16, %v413_v1 }
 0x1a0   :  { %v269_v29 = vpop.f32.mrf.mxu3  ;;  %v344_v53 = vmul.f32 %v552_v50, %v343_v52 }
 0x1a1   :  { %v291_v31 = vadd.f32 %v550_v18, %v290_v24  ;;  %v270_v36 = vadd.f32 %v269_v29, %v249_v28  ;;  %527 = vset.pattern.permute.xlu1 %v420_v19  ;;  %531 = vset.pattern.permute.xlu0 %v420_v19  ;;  %v537_v29 = vld [vmem:[%s815_s6] ss:$0 sm:$0xff]  ;;  %s497_s6 = sshll.u32 %s612_s5, 4  ;;  %s498_s6 = int_to_ptr.vmem [resolvable:$true] %s497_s6 }
 0x1a2   :  { %v345_v54 = vadd.f32 %v552_v50, %v344_v53 }
 0x1a3   :  { %v295_v37 = vsel %vm294_vm7, %v550_v18, %v291_v31 }
 0x1a4   :  { %v300_v39 = vsel %vm297_vm9, %v299_v35, %v295_v37  ;;  %v347_v55 = vsel %vm346_vm12, %v552_v50, %v345_v54 }
 0x1a5   :  { %v301_v41 = vmul.f32 %v300_v39, %v270_v36  ;;  %v432_v39 = vadd.s32 24, %v413_v1 }
 0x1a7   :  { %v312_v43 = vrot.slane %v301_v41, 7 }
 0x1a9   :  { %v314_v44 = vsel %vm313_vm10, %v312_v43, %v286_v42 }
 0x1aa   :  { %516 = vmatmul.msk.f32.vlgmr.msra.gmra.mxu0 %vm75_vm0, %v314_v44 }
 0x227   :  { %v334_v46 = vpop.f32.mrf.mxu0 }
 0x228   :  { %v335_v47 = vadd.f32 %v535_v45, %v334_v46 }
 0x22a   :  { %v338_v48 = vsel %vm337_vm11, %v335_v47, 0.0 }
 0x22b   :  { %339 = vadd.xlane.f32.xlu2 %v338_v48 }
 0x29e   :  { %v340_v56 = vpop.xlane.xlu2 %339 }
 0x29f   :  { %v348_v57 = vmul.f32 %v347_v55, %v340_v56 }
 0x2a1   :  { %v349_v58 = vsub.f32 %v335_v47, %v348_v57 }
 0x2a3   :  { %v350_v59 = vmul.f32 %v349_v58, %v349_v58 }
 0x2a5   :  { %v351_v60 = vsel %vm337_vm11, %v350_v59, 0.0 }
 0x2a6   :  { %352 = vadd.xlane.f32.xlu1 %v351_v60 }
 0x319   :  { %v353_v63 = vpop.xlane.xlu1 %352 }
 0x31a   :  { %v354_v0 = vmul.f32 %v353_v63, %v347_v55 }
 0x31c   :  { %v355_v18 = vadd.f32 1e-05, %v354_v0 }
 0x31e   :  { %553 = vrsqrt.f32 %v355_v18  ;;  %vm362_vm15 = vweird.f32 %v355_v18 }
 0x324   :  { %v554_v20 = vpop.eup %553 }
 0x325   :  { %v357_v21 = vmul.f32 %v554_v20, %v355_v18  ;;  %vm363_vm14 = vweird.f32 %v554_v20 }
 0x326   :  { %vm364_vm0 = vmor %vm362_vm15, %vm363_vm14 }
 0x327   :  { %v358_v22 = vmul.f32 %v554_v20, %v357_v21 }
 0x329   :  { %v359_v23 = vmul.f32 0.5, %v358_v22 }
 0x32b   :  { %v360_v24 = vsub.f32 1.5, %v359_v23 }
 0x32d   :  { %v361_v25 = vmul.f32 %v554_v20, %v360_v24 }
 0x32f   :  { %v365_v27 = vsel %vm364_vm0, %v554_v20, %v361_v25 }
 0x330   :  { %v366_v28 = vmul.f32 %v365_v27, %v349_v58 }
 0x332   :  { %v371_v30 = vmul.f32 %v536_v26, %v366_v28 }
 0x334   :  { %v376_v31 = vadd.f32 %v537_v29, %v371_v30 }
 0x336   :  { %v377_v32 = vmax.f32 %v376_v31, 0.0 }
 0x338   :  { %518 = vmatmul.msk.f32.vlgmr.msra.gmra.mxu1 %vm383_vm1, %v377_v32 }
 0x3b5   :  { %v408_v34 = vpop.f32.mrf.mxu1 }
 0x3b6   :  { %v409_v35 = vadd.f32 %v538_v33, %v408_v34 }
 0x3b8   :  { %v411_v36 = vperm.slane %v409_v35, 0  ;;  %v436_v37 = vperm.slane %v409_v35, 1 }
 0x3ba   :  { %447 = vperm.xlu0 %531, %v436_v37   ;;  %422 = vperm.xlu1 %527, %v411_v36  }
 0x3bb   :  { %416 = vperm.xlu2 %526, %v411_v36  }
 0x3c2   :  { %530 = vset.pattern.permute.xlu1 %v413_v1  ;;  %534 = vset.pattern.permute.xlu0 %v432_v39 }
 0x3c3   :  { %528 = vset.pattern.permute.xlu2 %v426_v38 }
 0x3ca   :  { %441 = vperm.xlu1 %530, %v436_v37  }
 0x3cb   :  { %428 = vperm.xlu2 %528, %v411_v36  }
 0x3d2   :  { %533 = vset.pattern.permute.xlu1 %v432_v39 }
 0x3d3   :  { %529 = vset.pattern.permute.xlu2 %v432_v39 }
 0x3da   :  { %459 = vperm.xlu1 %533, %v436_v37  }
 0x3db   :  { %434 = vperm.xlu2 %529, %v411_v36  }
 0x3e3   :  { %532 = vset.pattern.permute.xlu2 %v426_v38 }
 0x3eb   :  { %453 = vperm.xlu2 %532, %v436_v37  }
 0x415   :  { %v417_v40 = vpop.permute.xlu2 %416 }
 0x416   :  { %v461_v41 = vadd.f32 %v417_v40, %v704_v14  ;;  %v462_v42 = vadd.f32 %v417_v40, %v706_v15 }
 0x418   :  { %477 = vst [vmem:[#allocation6] sm:$0xff] %v461_v41 }
 0x419   :  { %478 = vst [vmem:[#allocation6 + $0x8] sm:$0xff] %v462_v42 }
 0x425   :  { %v429_v43 = vpop.permute.xlu2 %428 }
 0x426   :  { %v465_v44 = vadd.f32 %v429_v43, %v682_v6  ;;  %v466_v45 = vadd.f32 %v429_v43, %v684_v7 }
 0x428   :  { %481 = vst [vmem:[#allocation6 + $0x20] sm:$0xff] %v465_v44 }
 0x429   :  { %482 = vst [vmem:[#allocation6 + $0x28] sm:$0xff] %v466_v45 }
 0x42c   :  { %v448_v46 = vpop.permute.xlu0 %447  ;;  %v423_v47 = vpop.permute.xlu1 %422 }
 0x42d   :  { %v471_v48 = vadd.f32 %v448_v46, %v698_v12  ;;  %v472_v49 = vadd.f32 %v448_v46, %v700_v13  ;;  %v463_v50 = vadd.f32 %v423_v47, %v692_v10  ;;  %v464_v14 = vadd.f32 %v423_v47, %v696_v11 }
 0x42f   :  { %487 = vst [vmem:[#allocation6 + $0x50] sm:$0xff] %v471_v48 }
 0x430   :  { %488 = vst [vmem:[#allocation6 + $0x58] sm:$0xff] %v472_v49 }
 0x431   :  { %479 = vst [vmem:[#allocation6 + $0x10] sm:$0xff] %v463_v50 }
 0x432   :  { %480 = vst [vmem:[#allocation6 + $0x18] sm:$0xff] %v464_v14 }
 0x435   :  { %v435_v15 = vpop.permute.xlu2 %434 }
 0x436   :  { %v467_v6 = vadd.f32 %v435_v15, %v672_v2  ;;  %v468_v7 = vadd.f32 %v435_v15, %v674_v3 }
 0x438   :  { %483 = vst [vmem:[#allocation6 + $0x30] sm:$0xff] %v467_v6 }
 0x439   :  { %484 = vst [vmem:[#allocation6 + $0x38] sm:$0xff] %v468_v7 }
 0x43c   :  { %v442_v51 = vpop.permute.xlu1 %441 }
 0x43d   :  { %v469_v12 = vadd.f32 %v442_v51, %v710_v16  ;;  %v470_v13 = vadd.f32 %v442_v51, %v712_v17 }
 0x43f   :  { %485 = vst [vmem:[#allocation6 + $0x40] sm:$0xff] %v469_v12 }
 0x440   :  { %486 = vst [vmem:[#allocation6 + $0x48] sm:$0xff] %v470_v13 }
 0x445   :  { %v454_v10 = vpop.permute.xlu2 %453 }
 0x446   :  { %v473_v11 = vadd.f32 %v454_v10, %v688_v8  ;;  %v474_v52 = vadd.f32 %v454_v10, %v690_v9 }
 0x448   :  { %489 = vst [vmem:[#allocation6 + $0x60] sm:$0xff] %v473_v11 }
 0x449   :  { %490 = vst [vmem:[#allocation6 + $0x68] sm:$0xff] %v474_v52 }
 0x44c   :  { %v460_v2 = vpop.permute.xlu1 %459 }
 0x44d   :  { %v475_v3 = vadd.f32 %v460_v2, %v676_v4  ;;  %v476_v16 = vadd.f32 %v460_v2, %v680_v5 }
 0x44f   :  { %491 = vst [vmem:[#allocation6 + $0x70] sm:$0xff] %v475_v3 }
 0x450   :  { %492 = vst [vmem:[#allocation6 + $0x78] sm:$0xff] %v476_v16 }
 0x451   :  { %505 = dma.vmem_to_hbm [thread:$0]  %s498_s6, 2048, %s500_s12, [#allocation5], %s608_s16, %s608_s16, %s609_s17  }
 0x452   :  { %605 = dma.done.wait [#allocation5], 2048  }
 0x453   :  { %606 = vsyncadd [#allocation5], 4294965248 }
 0x454   :  { %510 = vsyncpa [#allocation4], 1 }
 0x455   :  { %511 = vsyncpa [#allocation5], 1 }

</bundles_post_ra>
